<compile_context>
chip_gen: v5e
topology: v5e:2x2
jax: 0.10.0
libtpu: 0.0.40
codegen_flags: <defaults>
</compile_context>

<pallas_src>
import functools

import jax
import jax.numpy as jnp
from jax.experimental import pallas as pl
from jax.experimental.pallas import tpu as pltpu

# STL constants from the module __init__
C1 = (25.0, 25.0)
R1 = 5.0
C2 = (25.0, 15.0)
R2 = 5.0
X_LO, X_HI = 5.0, 45.0
Y_LO, Y_HI = 5.0, 45.0


def _round_up(n, m):
    return ((n + m - 1) // m) * m


def _stl_maze_kernel(x_ref, w1_ref, b1_ref, w2_ref, b2_ref, rob_ref, *traj_refs,
                     t_real, t_sub, half_x, off_x, half_y, off_y):
    """Time-on-sublane layout: every array is [time(/channel) rows, batch lanes]."""
    f32 = jnp.float32
    inf = f32(jnp.inf)

    # ----- generator: 2-layer tanh MLP (MXU matmuls, f32 accumulation) -----
    #   h = tanh(w1^T x^T + b1)   : [H, bB]
    #   g = tanh(w2^T h   + b2)   : [2*Tsub, bB]  rows = [x(0..T-1), pad, y(0..T-1), pad]
    h = jnp.tanh(jnp.dot(w1_ref[...], x_ref[...], preferred_element_type=f32)
                 + b1_ref[...])
    h = h.astype(w2_ref.dtype)                       # bf16 path: narrow MXU operand
    g = jnp.tanh(jnp.dot(w2_ref[...], h, preferred_element_type=f32)
                 + b2_ref[...])

    # split channels with 8-aligned static sublane slices (no relayout cost)
    gx = g[:t_sub, :]
    gy = g[t_sub:, :]

    # ----- rescale folded into one FMA per channel:
    #       mins + (g + 1) * (maxs - mins) / 2  ==  g * half + (mins + half)
    rx = gx * half_x + off_x
    ry = gy * half_y + off_y

    if traj_refs:                                    # compiled only when return_traj
        traj_ref = traj_refs[0]
        traj_ref[pl.ds(0, t_sub), :] = rx
        traj_ref[pl.ds(t_sub, t_sub), :] = ry

    # ----- per-step robustness of the And-tree (chained mins -> short live ranges)
    rob = jnp.minimum(rx - X_LO, X_HI - rx)
    rob = jnp.minimum(rob, ry - Y_LO)
    rob = jnp.minimum(rob, Y_HI - ry)
    d1 = jnp.maximum(jnp.abs(rx - C1[0]), jnp.abs(ry - C1[1]))   # inf-norm dist to C1
    rob = jnp.minimum(rob, d1 - R1)
    d2 = jnp.maximum(jnp.abs(rx - C2[0]), jnp.abs(ry - C2[1]))   # inf-norm dist to C2
    rob = jnp.minimum(rob, d2 - R2)

    # padded time rows (>= T) -> +inf (identity for min)
    row = jax.lax.broadcasted_iota(jnp.int32, rob.shape, 0)
    rob_ref[...] = jnp.where(row < t_real, rob, inf)

    # ----- Globally (unbound): suffix min over time (sublane axis) -----
    # O(log T) doubling scan, in place on the output ref:
    #   rob[t] = min(rob[t], rob[t+k])  for t < Tsub - k
    # Sublane-offset VMEM reads mean no circular wrap and no per-step mask.
    k = 1
    while k < t_real:                                # unrolled at trace time
        n = t_sub - k
        lo = rob_ref[pl.ds(0, n), :]
        hi = rob_ref[pl.ds(k, n), :]
        rob_ref[pl.ds(0, n), :] = jnp.minimum(lo, hi)
        k *= 2


def cond_gen_w_quant_stl_maze(noise, obs_data, params, *, T, mins, maxs,
                              return_traj=False, mxu_dtype=jnp.float32):
    """JAX/Pallas equivalent of condGen_w_QuantSTL_maze.forward.

    Returns the Globally robustness trajectory [B, 1, T] (robustness[:, 0, 0] is
    the scalar robustness at time 0), and the rescaled trajectory [B, 2, T] when
    return_traj=True.
    """
    w1, b1, w2, b2 = params
    noise = jnp.asarray(noise, jnp.float32)
    obs_data = jnp.asarray(obs_data, jnp.float32)
    B = noise.shape[0]
    x = jnp.concatenate([noise, obs_data], axis=1)               # [B, D_in]
    D_in = x.shape[1]
    H = w1.shape[1]

    # time lives on the sublane axis: pad each channel to a multiple of 8 rows
    Tsub = _round_up(max(T, 1), 8)

    # batch lives on the lane axis: 128-lane blocks (256 for larger B to amortize
    # the ~0.35us per-grid-step overhead)
    bB = 128 if B <= 128 else 256
    Bp = _round_up(B, bB)
    n_blocks = Bp // bB

    # transposed, lane-padded input [D_in, Bp]
    xT = jnp.pad(x.T, ((0, 0), (0, Bp - B))).astype(mxu_dtype)

    # Transposed weights. Second layer rows = [x(0..T-1), pad, y(0..T-1), pad].
    # NOTE: assumes w2 output columns are ordered [x(0..T-1), y(0..T-1)]
    #       (row-major flatten of the generator's [B, 2, T] output).
    w1t = jnp.asarray(w1, jnp.float32).T.astype(mxu_dtype)       # [H, D_in]
    b1t = jnp.asarray(b1, jnp.float32).reshape(H, 1)
    w2f = jnp.asarray(w2, jnp.float32)                           # [H, 2T]
    b2f = jnp.asarray(b2, jnp.float32).reshape(2 * T)
    pad_rows = ((0, Tsub - T), (0, 0))
    w2t = jnp.concatenate(
        [jnp.pad(w2f[:, :T].T, pad_rows),
         jnp.pad(w2f[:, T:2 * T].T, pad_rows)], axis=0).astype(mxu_dtype)   # [2Tsub, H]
    b2t = jnp.concatenate(
        [jnp.pad(b2f[:T].reshape(T, 1), pad_rows),
         jnp.pad(b2f[T:].reshape(T, 1), pad_rows)], axis=0)                 # [2Tsub, 1]

    half_x = (float(maxs[0]) - float(mins[0])) * 0.5
    half_y = (float(maxs[1]) - float(mins[1])) * 0.5
    off_x = float(mins[0]) + half_x
    off_y = float(mins[1]) + half_y

    kernel = functools.partial(
        _stl_maze_kernel, t_real=T, t_sub=Tsub,
        half_x=half_x, off_x=off_x, half_y=half_y, off_y=off_y)

    resident = lambda i: (0, 0)          # weights stay in VMEM across the batch grid
    batched = lambda i: (0, i)           # batch blocks stream along the lane axis

    in_specs = [
        pl.BlockSpec((D_in, bB), batched),       # x^T (streamed per batch block)
        pl.BlockSpec((H, D_in), resident),       # w1^T
        pl.BlockSpec((H, 1), resident),          # b1
        pl.BlockSpec((2 * Tsub, H), resident),   # fused [w2x; w2y]^T
        pl.BlockSpec((2 * Tsub, 1), resident),   # fused [b2x; b2y]
    ]
    rob_spec = pl.BlockSpec((Tsub, bB), batched)
    rob_shape = jax.ShapeDtypeStruct((Tsub, Bp), jnp.float32)

    itemsize = jnp.dtype(mxu_dtype).itemsize
    out_bytes = Tsub * Bp * 4 + (2 * Tsub * Bp * 4 if return_traj else 0)
    cost = pl.CostEstimate(
        flops=2 * Bp * D_in * H + 4 * Bp * H * Tsub + 24 * Bp * Tsub,
        transcendentals=Bp * (H + 2 * Tsub),
        bytes_accessed=(Bp * D_in + D_in * H + 2 * Tsub * H) * itemsize
                       + (H + 2 * Tsub) * 4 + out_bytes,
    )

    if return_traj:
        out_specs = (rob_spec, pl.BlockSpec((2 * Tsub, bB), batched))
        out_shape = (rob_shape, jax.ShapeDtypeStruct((2 * Tsub, Bp), jnp.float32))
    else:
        out_specs = rob_spec            # robustness-only variant: no traj writeback
        out_shape = rob_shape

    outs = pl.pallas_call(
        kernel,
        grid=(n_blocks,),
        in_specs=in_specs,
        out_specs=out_specs,
        out_shape=out_shape,
        compiler_params=pltpu.CompilerParams(
            dimension_semantics=("parallel",)),
        cost_estimate=cost,
    )(xT, w1t, b1t, w2t, b2t)

    if return_traj:
        rob_arr, traj = outs
    else:
        rob_arr = outs

    robustness = rob_arr[:T, :B].T[:, None, :]                   # [B, 1, T]
    if return_traj:
        rx = traj[0:T, :B].T
        ry = traj[Tsub:Tsub + T, :B].T
        return robustness, jnp.stack([rx, ry], axis=1)           # [B, 2, T]
    return robustness


def _reference(noise, obs_data, params, *, T, mins, maxs):
    """Pure-JAX reference mirroring the PyTorch semantics (NCT layout)."""
    w1, b1, w2, b2 = params
    x = jnp.concatenate([noise, obs_data], axis=1)
    h = jnp.tanh(x @ w1 + b1)
    g = jnp.tanh(h @ w2 + b2)
    sig = g.reshape(-1, 2, T)                                     # [B, 2, T]
    mins_a = jnp.asarray(mins, jnp.float32).reshape(1, 2, 1)
    maxs_a = jnp.asarray(maxs, jnp.float32).reshape(1, 2, 1)
    resc = mins_a + (sig + 1.0) * (maxs_a - mins_a) / 2.0
    c1 = jnp.asarray(C1, jnp.float32).reshape(1, 2, 1)
    c2 = jnp.asarray(C2, jnp.float32).reshape(1, 2, 1)
    d1 = jnp.max(jnp.abs(resc - c1), axis=1, keepdims=True)
    d2 = jnp.max(jnp.abs(resc - c2), axis=1, keepdims=True)
    cat = jnp.concatenate([resc, d1, d2], axis=1)                 # [B, 4, T]
    rob = jnp.minimum(
        jnp.minimum(jnp.minimum(cat[:, 0] - X_LO, X_HI - cat[:, 0]),
                    jnp.minimum(cat[:, 1] - Y_LO, Y_HI - cat[:, 1])),
        jnp.minimum(cat[:, 2] - R1, cat[:, 3] - R2))
    rob_g = jax.lax.cummin(rob, axis=1, reverse=True)
    return rob_g[:, None, :], resc


if __name__ == "__main__":
    # Small shapes consistent with the module: batch=2, noise dim=16,
    # obs feature dim=16, hidden=32, trajectory length T=8, 2 spatial channels.
    B, Z, DOBS, H, T = 2, 16, 16, 32, 8
    MINS = (0.0, 0.0)
    MAXES = (50.0, 50.0)

    key = jax.random.PRNGKey(0)
    ks = jax.random.split(key, 8)
    noise = jax.random.normal(ks[0], (B, Z), jnp.float32)
    obs_data = jax.random.normal(ks[1], (B, DOBS), jnp.float32)

    # Deterministic synthetic generator weights (2-layer tanh MLP -> [B, 2*T]).
    params = (
        0.5 * jax.random.normal(ks[2], (Z + DOBS, H), jnp.float32),
        0.1 * jax.random.normal(ks[3], (1, H), jnp.float32),
        0.5 * jax.random.normal(ks[4], (H, 2 * T), jnp.float32),
        0.1 * jax.random.normal(ks[5], (1, 2 * T), jnp.float32),
    )

    # ---- f32 path with trajectory output ----
    rob, resc = cond_gen_w_quant_stl_maze(
        noise, obs_data, params, T=T, mins=MINS, maxs=MAXES, return_traj=True)
    jax.block_until_ready((rob, resc))
    rob_ref, resc_ref = _reference(noise, obs_data, params, T=T, mins=MINS, maxs=MAXES)
    assert rob.shape == (B, 1, T) and resc.shape == (B, 2, T)
    assert jnp.allclose(rob, rob_ref, rtol=1e-4, atol=1e-4)
    assert jnp.allclose(resc, resc_ref, rtol=1e-4, atol=1e-4)

    # ---- robustness-only path, multi-block batch grid (bB=256, 2 blocks) ----
    B2 = 300
    noise2 = jax.random.normal(ks[6], (B2, Z), jnp.float32)
    obs2 = jax.random.normal(ks[7], (B2, DOBS), jnp.float32)
    rob2 = cond_gen_w_quant_stl_maze(
        noise2, obs2, params, T=T, mins=MINS, maxs=MAXES)
    jax.block_until_ready(rob2)
    rob2_ref, _ = _reference(noise2, obs2, params, T=T, mins=MINS, maxs=MAXES)
    assert rob2.shape == (B2, 1, T)
    assert jnp.allclose(rob2, rob2_ref, rtol=1e-4, atol=1e-4)

    # ---- T not a multiple of 8 (exercises sublane padding + mask + scan) ----
    T3 = 5
    params3 = (params[0], params[1],
               0.5 * jax.random.normal(ks[4], (H, 2 * T3), jnp.float32),
               0.1 * jax.random.normal(ks[5], (1, 2 * T3), jnp.float32))
    rob3 = cond_gen_w_quant_stl_maze(
        noise, obs_data, params3, T=T3, mins=MINS, maxs=MAXES)
    jax.block_until_ready(rob3)
    rob3_ref, _ = _reference(noise, obs_data, params3, T=T3, mins=MINS, maxs=MAXES)
    assert rob3.shape == (B, 1, T3)
    assert jnp.allclose(rob3, rob3_ref, rtol=1e-4, atol=1e-4)

    # ---- bf16 MXU-operand path (perf option; f32 accumulation & elementwise) ----
    rob_bf = cond_gen_w_quant_stl_maze(
        noise, obs_data, params, T=T, mins=MINS, maxs=MAXES, mxu_dtype=jnp.bfloat16)
    jax.block_until_ready(rob_bf)
    assert jnp.allclose(rob_bf, rob_ref, rtol=0.05, atol=0.5)

    # TODO(synk): the external `stl` library's top-level quantitative() may slice
    # z[:, 0, 0]; here the full Globally robustness trajectory [B, 1, T] is
    # returned (rob[:, 0, 0] is that scalar).
    print("KERNEL_OK")
</pallas_src>

<mosaic_0001>
module attributes {stable_mosaic.version = 11 : i64} {
  func.func @_stl_maze_kernel(%arg0: i32, %arg1: memref<32x128xf32, #tpu.memory_space<vmem>>, %arg2: memref<32x32xf32, #tpu.memory_space<vmem>>, %arg3: memref<32x1xf32, #tpu.memory_space<vmem>>, %arg4: memref<16x32xf32, #tpu.memory_space<vmem>>, %arg5: memref<16x1xf32, #tpu.memory_space<vmem>>, %arg6: memref<8x128xf32, #tpu.memory_space<vmem>>, %arg7: memref<16x128xf32, #tpu.memory_space<vmem>>) attributes {dimension_semantics = [#tpu.dimension_semantics<parallel>], iteration_bounds = array<i64: 1>, scalar_prefetch = 0 : i64, scratch_operands = 0 : i64, tpu.core_type = #tpu.core_type<tc>, window_params = [{transform_indices = @transform_0, window_bounds = array<i64: 32, 128>}, {pipeline_mode = #tpu.pipeline_mode<synchronous>, transform_indices = @transform_1, window_bounds = array<i64: 32, 32>}, {pipeline_mode = #tpu.pipeline_mode<synchronous>, transform_indices = @transform_2, window_bounds = array<i64: 32, 1>}, {pipeline_mode = #tpu.pipeline_mode<synchronous>, transform_indices = @transform_3, window_bounds = array<i64: 16, 32>}, {pipeline_mode = #tpu.pipeline_mode<synchronous>, transform_indices = @transform_4, window_bounds = array<i64: 16, 1>}, {transform_indices = @transform_5, window_bounds = array<i64: 8, 128>}, {transform_indices = @transform_6, window_bounds = array<i64: 16, 128>}]} {
    %c0 = arith.constant 0 : index
    %c0_0 = arith.constant 0 : index
    %0 = vector.load %arg2[%c0, %c0_0] : memref<32x32xf32, #tpu.memory_space<vmem>>, vector<32x32xf32>
    %c0_1 = arith.constant 0 : index
    %c0_2 = arith.constant 0 : index
    %1 = vector.load %arg1[%c0_1, %c0_2] : memref<32x128xf32, #tpu.memory_space<vmem>>, vector<32x128xf32>
    %cst = arith.constant dense<0.000000e+00> : vector<32x128xf32>
    %2 = tpu.matmul %0, %1, %cst {dimension_numbers = #tpu.dot_dimension_numbers<[1], [0], [0], [1], [0, 0, 1, 1], [], []>} : vector<32x32xf32>, vector<32x128xf32>, vector<32x128xf32> -> vector<32x128xf32>
    %c0_3 = arith.constant 0 : index
    %c0_4 = arith.constant 0 : index
    %3 = vector.load %arg3[%c0_3, %c0_4] : memref<32x1xf32, #tpu.memory_space<vmem>>, vector<32x1xf32>
    %4 = vector.broadcast %3 : vector<32x1xf32> to vector<32x128xf32>
    %5 = arith.addf %2, %4 : vector<32x128xf32>
    %6 = math.tanh %5 : vector<32x128xf32>
    %c0_5 = arith.constant 0 : index
    %c0_6 = arith.constant 0 : index
    %7 = vector.load %arg4[%c0_5, %c0_6] : memref<16x32xf32, #tpu.memory_space<vmem>>, vector<16x32xf32>
    %cst_7 = arith.constant dense<0.000000e+00> : vector<16x128xf32>
    %8 = tpu.matmul %7, %6, %cst_7 {dimension_numbers = #tpu.dot_dimension_numbers<[1], [0], [0], [1], [0, 0, 1, 1], [], []>} : vector<16x32xf32>, vector<32x128xf32>, vector<16x128xf32> -> vector<16x128xf32>
    %c0_8 = arith.constant 0 : index
    %c0_9 = arith.constant 0 : index
    %9 = vector.load %arg5[%c0_8, %c0_9] : memref<16x1xf32, #tpu.memory_space<vmem>>, vector<16x1xf32>
    %10 = vector.broadcast %9 : vector<16x1xf32> to vector<16x128xf32>
    %11 = arith.addf %8, %10 : vector<16x128xf32>
    %12 = math.tanh %11 : vector<16x128xf32>
    %13 = vector.extract_strided_slice %12 {offsets = [0, 0], sizes = [8, 128], strides = [1, 1]} : vector<16x128xf32> to vector<8x128xf32>
    %14 = vector.extract_strided_slice %12 {offsets = [8, 0], sizes = [8, 128], strides = [1, 1]} : vector<16x128xf32> to vector<8x128xf32>
    %cst_10 = arith.constant 2.500000e+01 : f32
    %15 = vector.broadcast %cst_10 : f32 to vector<8x128xf32>
    %16 = arith.mulf %13, %15 : vector<8x128xf32>
    %cst_11 = arith.constant 2.500000e+01 : f32
    %17 = vector.broadcast %cst_11 : f32 to vector<8x128xf32>
    %18 = arith.addf %16, %17 : vector<8x128xf32>
    %cst_12 = arith.constant 2.500000e+01 : f32
    %19 = vector.broadcast %cst_12 : f32 to vector<8x128xf32>
    %20 = arith.mulf %14, %19 : vector<8x128xf32>
    %cst_13 = arith.constant 2.500000e+01 : f32
    %21 = vector.broadcast %cst_13 : f32 to vector<8x128xf32>
    %22 = arith.addf %20, %21 : vector<8x128xf32>
    %c0_14 = arith.constant 0 : index
    %c0_15 = arith.constant 0 : index
    %23 = vector.load %arg7[%c0_14, %c0_15] : memref<16x128xf32, #tpu.memory_space<vmem>>, vector<8x128xf32>
    tpu.vector_store %arg7[%c0_14, %c0_15], %18 {strides = array<i32>} : memref<16x128xf32, #tpu.memory_space<vmem>>, vector<8x128xf32>,
    %c8 = arith.constant 8 : index
    %c0_16 = arith.constant 0 : index
    %24 = vector.load %arg7[%c8, %c0_16] : memref<16x128xf32, #tpu.memory_space<vmem>>, vector<8x128xf32>
    tpu.vector_store %arg7[%c8, %c0_16], %22 {strides = array<i32>} : memref<16x128xf32, #tpu.memory_space<vmem>>, vector<8x128xf32>,
    %cst_17 = arith.constant 5.000000e+00 : f32
    %25 = vector.broadcast %cst_17 : f32 to vector<8x128xf32>
    %26 = arith.subf %18, %25 : vector<8x128xf32>
    %cst_18 = arith.constant 4.500000e+01 : f32
    %27 = vector.broadcast %cst_18 : f32 to vector<8x128xf32>
    %28 = arith.subf %27, %18 : vector<8x128xf32>
    %29 = arith.minimumf %26, %28 : vector<8x128xf32>
    %cst_19 = arith.constant 5.000000e+00 : f32
    %30 = vector.broadcast %cst_19 : f32 to vector<8x128xf32>
    %31 = arith.subf %22, %30 : vector<8x128xf32>
    %32 = arith.minimumf %29, %31 : vector<8x128xf32>
    %cst_20 = arith.constant 4.500000e+01 : f32
    %33 = vector.broadcast %cst_20 : f32 to vector<8x128xf32>
    %34 = arith.subf %33, %22 : vector<8x128xf32>
    %35 = arith.minimumf %32, %34 : vector<8x128xf32>
    %cst_21 = arith.constant 2.500000e+01 : f32
    %36 = vector.broadcast %cst_21 : f32 to vector<8x128xf32>
    %37 = arith.subf %18, %36 : vector<8x128xf32>
    %38 = math.absf %37 : vector<8x128xf32>
    %cst_22 = arith.constant 2.500000e+01 : f32
    %39 = vector.broadcast %cst_22 : f32 to vector<8x128xf32>
    %40 = arith.subf %22, %39 : vector<8x128xf32>
    %41 = math.absf %40 : vector<8x128xf32>
    %42 = arith.maximumf %38, %41 : vector<8x128xf32>
    %cst_23 = arith.constant 5.000000e+00 : f32
    %43 = vector.broadcast %cst_23 : f32 to vector<8x128xf32>
    %44 = arith.subf %42, %43 : vector<8x128xf32>
    %45 = arith.minimumf %35, %44 : vector<8x128xf32>
    %cst_24 = arith.constant 2.500000e+01 : f32
    %46 = vector.broadcast %cst_24 : f32 to vector<8x128xf32>
    %47 = arith.subf %18, %46 : vector<8x128xf32>
    %48 = math.absf %47 : vector<8x128xf32>
    %cst_25 = arith.constant 1.500000e+01 : f32
    %49 = vector.broadcast %cst_25 : f32 to vector<8x128xf32>
    %50 = arith.subf %22, %49 : vector<8x128xf32>
    %51 = math.absf %50 : vector<8x128xf32>
    %52 = arith.maximumf %48, %51 : vector<8x128xf32>
    %cst_26 = arith.constant 5.000000e+00 : f32
    %53 = vector.broadcast %cst_26 : f32 to vector<8x128xf32>
    %54 = arith.subf %52, %53 : vector<8x128xf32>
    %55 = arith.minimumf %45, %54 : vector<8x128xf32>
    %56 = tpu.iota {dimensions = array<i32: 0>} : vector<8x128xi32>
    %c8_i32 = arith.constant 8 : i32
    %57 = vector.broadcast %c8_i32 : i32 to vector<8x128xi32>
    %58 = arith.cmpi slt, %56, %57 : vector<8x128xi32>
    %cst_27 = arith.constant 0x7F800000 : f32
    %59 = vector.broadcast %cst_27 : f32 to vector<8x128xf32>
    %60 = arith.select %58, %55, %59 : vector<8x128xi1>, vector<8x128xf32>
    %c0_28 = arith.constant 0 : index
    %c0_29 = arith.constant 0 : index
    %61 = vector.load %arg6[%c0_28, %c0_29] : memref<8x128xf32, #tpu.memory_space<vmem>>, vector<8x128xf32>
    tpu.vector_store %arg6[%c0_28, %c0_29], %60 {strides = array<i32>} : memref<8x128xf32, #tpu.memory_space<vmem>>, vector<8x128xf32>,
    %c0_30 = arith.constant 0 : index
    %c0_31 = arith.constant 0 : index
    %62 = vector.load %arg6[%c0_30, %c0_31] : memref<8x128xf32, #tpu.memory_space<vmem>>, vector<7x128xf32>
    %c1 = arith.constant 1 : index
    %c0_32 = arith.constant 0 : index
    %63 = vector.load %arg6[%c1, %c0_32] : memref<8x128xf32, #tpu.memory_space<vmem>>, vector<7x128xf32>
    %64 = arith.minimumf %62, %63 : vector<7x128xf32>
    %c0_33 = arith.constant 0 : index
    %c0_34 = arith.constant 0 : index
    %65 = vector.load %arg6[%c0_33, %c0_34] : memref<8x128xf32, #tpu.memory_space<vmem>>, vector<7x128xf32>
    tpu.vector_store %arg6[%c0_33, %c0_34], %64 {strides = array<i32>} : memref<8x128xf32, #tpu.memory_space<vmem>>, vector<7x128xf32>,
    %c0_35 = arith.constant 0 : index
    %c0_36 = arith.constant 0 : index
    %66 = vector.load %arg6[%c0_35, %c0_36] : memref<8x128xf32, #tpu.memory_space<vmem>>, vector<6x128xf32>
    %c2 = arith.constant 2 : index
    %c0_37 = arith.constant 0 : index
    %67 = vector.load %arg6[%c2, %c0_37] : memref<8x128xf32, #tpu.memory_space<vmem>>, vector<6x128xf32>
    %68 = arith.minimumf %66, %67 : vector<6x128xf32>
    %c0_38 = arith.constant 0 : index
    %c0_39 = arith.constant 0 : index
    %69 = vector.load %arg6[%c0_38, %c0_39] : memref<8x128xf32, #tpu.memory_space<vmem>>, vector<6x128xf32>
    tpu.vector_store %arg6[%c0_38, %c0_39], %68 {strides = array<i32>} : memref<8x128xf32, #tpu.memory_space<vmem>>, vector<6x128xf32>,
    %c0_40 = arith.constant 0 : index
    %c0_41 = arith.constant 0 : index
    %70 = vector.load %arg6[%c0_40, %c0_41] : memref<8x128xf32, #tpu.memory_space<vmem>>, vector<4x128xf32>
    %c4 = arith.constant 4 : index
    %c0_42 = arith.constant 0 : index
    %71 = vector.load %arg6[%c4, %c0_42] : memref<8x128xf32, #tpu.memory_space<vmem>>, vector<4x128xf32>
    %72 = arith.minimumf %70, %71 : vector<4x128xf32>
    %c0_43 = arith.constant 0 : index
    %c0_44 = arith.constant 0 : index
    %73 = vector.load %arg6[%c0_43, %c0_44] : memref<8x128xf32, #tpu.memory_space<vmem>>, vector<4x128xf32>
    tpu.vector_store %arg6[%c0_43, %c0_44], %72 {strides = array<i32>} : memref<8x128xf32, #tpu.memory_space<vmem>>, vector<4x128xf32>,
    return
  }
  func.func @transform_0(%arg0: i32) -> (i32, i32) {
    %c0_i32 = arith.constant 0 : i32
    %c0_i32_0 = arith.constant 0 : i32
    return %c0_i32, %arg0 : i32, i32
  }
  func.func @transform_1(%arg0: i32) -> (i32, i32) {
    %c0_i32 = arith.constant 0 : i32
    %c0_i32_0 = arith.constant 0 : i32
    %c0_i32_1 = arith.constant 0 : i32
    return %c0_i32, %c0_i32_0 : i32, i32
  }
  func.func @transform_2(%arg0: i32) -> (i32, i32) {
    %c0_i32 = arith.constant 0 : i32
    %c0_i32_0 = arith.constant 0 : i32
    %c0_i32_1 = arith.constant 0 : i32
    return %c0_i32, %c0_i32_0 : i32, i32
  }
  func.func @transform_3(%arg0: i32) -> (i32, i32) {
    %c0_i32 = arith.constant 0 : i32
    %c0_i32_0 = arith.constant 0 : i32
    %c0_i32_1 = arith.constant 0 : i32
    return %c0_i32, %c0_i32_0 : i32, i32
  }
  func.func @transform_4(%arg0: i32) -> (i32, i32) {
    %c0_i32 = arith.constant 0 : i32
    %c0_i32_0 = arith.constant 0 : i32
    %c0_i32_1 = arith.constant 0 : i32
    return %c0_i32, %c0_i32_0 : i32, i32
  }
  func.func @transform_5(%arg0: i32) -> (i32, i32) {
    %c0_i32 = arith.constant 0 : i32
    %c0_i32_0 = arith.constant 0 : i32
    return %c0_i32, %arg0 : i32, i32
  }
  func.func @transform_6(%arg0: i32) -> (i32, i32) {
    %c0_i32 = arith.constant 0 : i32
    %c0_i32_0 = arith.constant 0 : i32
    return %c0_i32, %arg0 : i32, i32
  }
}

</mosaic_0001>

<bundles_post_ra>
// kernel: tpu_custom_call.1
= control target key start
LH: loop header
LB: loop body
LE: loop exit
PB: predicated region body
PF: predicated region fallthrough
CT: control target
= control target key end

     0   :  { %12 = vsyncpa [#allocation3], 0  ;;  %s458_s0 = inlined_call_operand.vmem [shape: f32[32,128], index: 0, kind: input, shape index: {}]   ;;  %s459_s1 = inlined_call_operand.hbm [shape: f32[32,32], index: 1, kind: input, shape index: {}]   ;;  %s460_s2 = inlined_call_operand.vmem [shape: f32[32,1], index: 2, kind: input, shape index: {}]   ;;  %s461_s3 = inlined_call_operand.vmem [shape: f32[16,32], index: 3, kind: input, shape index: {}]   ;;  %s462_s4 = inlined_call_operand.vmem [shape: f32[16,1], index: 4, kind: input, shape index: {}]   ;;  %s463_s5 = inlined_call_operand.hbm [shape: f32[8,128], index: 5, kind: output, shape index: {0}]   ;;  %s464_s6 = inlined_call_operand.hbm [shape: f32[16,128], index: 6, kind: output, shape index: {1}]  }
   0x1   :  { %13 = vsyncpa [#allocation4], 0 }
   0x2   :  { %14 = vsyncpa [#allocation7], 0  ;;  %s21_s23 = sshll.u32 %s459_s1, 4  ;;  %s360_s24 = smov [#allocation2]   ;;  %s22_s23 = int_to_ptr.hbm [resolvable:$true] %s21_s23 }
   0x3   :  { %s23_s25 = sshll.u32 %s360_s24, 4  ;;  %s361_s26 = smov 128   ;;  %s24_s25 = int_to_ptr.vmem [resolvable:$true] %s23_s25 }
   0x4   :  { %s362_s27 = smov 8  }
   0x5   :  { %29 = dma.hbm_to_vmem [thread:$0]  %s22_s23, 512, %s24_s25, [#allocation3], %s361_s26, %s361_s26, %s362_s27  }
   0x6   :  { %354 = dma.done.wait [#allocation3], 512  }
   0x7   :  { %355 = vsyncadd [#allocation3], 4294966784  ;;  %v363_v0 = vmov 0   ;;  %v47_v1 = vld [vmem:[%s458_s0 + $0x18] sm:$0xff]  ;;  %v46_v2 = vld [vmem:[%s458_s0 + $0x10] sm:$0xff]  ;;  %vm72_vm0 = vcmask 261120  }
   0x8   :  { %267 = vset.pattern.permute.xlu0 %v363_v0  ;;  %268 = vset.pattern.permute.xlu1 %v363_v0  ;;  %v45_v3 = vld [vmem:[%s458_s0 + $0x8] sm:$0xff]  ;;  %v51_v4 = vld [vmem:[%s460_s2 + $0x18] sm:$0xff]  ;;  %v44_v6 = vld [vmem:[%s458_s0] sm:$0xff]  ;;  %s364_s24 = smov [#allocation6]   ;;  %s212_s30 = sshll.u32 %s463_s5, 4  ;;  %s213_s30 = int_to_ptr.hbm [resolvable:$true] %s212_s30 }
   0x9   :  { %269 = vset.pattern.permute.xlu2 %v363_v0  ;;  %253 = vmatpush.msra.mxu2 %v47_v1  ;;  %v49_v5 = vld [vmem:[%s460_s2 + $0x8] sm:$0xff]  ;;  %v43_v8 = vld [vmem:[#allocation2 + $0x18] sm:$0xff]  ;;  %v40_v9 = vld [vmem:[#allocation2] sm:$0xff]  ;;  %s220_s25 = sshll.u32 %s364_s24, 4  ;;  %s221_s25 = int_to_ptr.vmem [resolvable:$true] %s220_s25 }
   0xa   :  { %254 = vmatpush.msra.mxu3 %v47_v1  ;;  %97 = vmatpush.msra.mxu0 %v47_v1  ;;  %v41_v7 = vld [vmem:[#allocation2 + $0x8] sm:$0xff]  ;;  %v50_v10 = vld [vmem:[%s460_s2 + $0x10] sm:$0xff]  ;;  %v48_v11 = vld [vmem:[%s460_s2] sm:$0xff] }
   0xb   :  { %255 = vmatpush.msra.mxu2 %v46_v2  ;;  %69 = vperm.xlu0 %267, %v51_v4   ;;  %v42_v12 = vld [vmem:[#allocation2 + $0x10] sm:$0xff]  ;;  %v120_v15 = vld [vmem:[%s462_s4] sm:$0xff]  ;;  %v121_v19 = vld [vmem:[%s462_s4 + $0x8] sm:$0xff] }
   0xc   :  { %256 = vmatpush.msra.mxu3 %v46_v2  ;;  %98 = vmatpush.msra.mxu0 %v46_v2  ;;  %v118_v30 = vld [vmem:[%s461_s3] sm:$0xff]  ;;  %v119_v32 = vld [vmem:[%s461_s3 + $0x8] sm:$0xff]  ;;  %s222_s3 = sshll.u32 %s464_s6, 4  ;;  %s365_s6 = smov [#allocation5]   ;;  %s223_s3 = int_to_ptr.hbm [resolvable:$true] %s222_s3 }
   0xd   :  { %257 = vmatpush.msra.mxu2 %v45_v3  ;;  %59 = vperm.xlu1 %268, %v49_v5  }
   0xe   :  { %258 = vmatpush.msra.mxu3 %v45_v3  ;;  %99 = vmatpush.msra.mxu0 %v45_v3 }
   0xf   :  { %259 = vmatpush.msra.mxu2 %v44_v6  ;;  %124 = vperm.xlu2 %269, %v120_v15  }
  0x10   :  { %260 = vmatpush.msra.mxu3 %v44_v6  ;;  %241 = vmatmul.msk.f32.vlgmr.msra.gmra.mxu2 %vm72_vm0, %v41_v7 }
  0x11   :  { %243 = vmatmul.msk.f32.vlgmr.msra.gmra.mxu3 %vm72_vm0, %v43_v8  ;;  %100 = vmatpush.msra.mxu0 %v44_v6 }
  0x12   :  { %240 = vmatmul.msk.f32.vlgmr.msra.gmra.mxu0 %vm72_vm0, %v40_v9 }
  0x13   :  { %64 = vperm.xlu0 %267, %v50_v10  }
  0x15   :  { %54 = vperm.xlu1 %268, %v48_v11  }
  0x17   :  { %129 = vperm.xlu2 %269, %v121_v19  }
  0x18   :  { %242 = vmatmul.msk.f32.gmra.mxu2 %vm72_vm0, %v42_v12 }
  0x69   :  { %v125_v33 = vpop.permute.xlu2 %124 }
  0x71   :  { %v130_v36 = vpop.permute.xlu2 %129 }
  0x7d   :  { %v70_v13 = vpop.permute.xlu0 %69 }
  0x7f   :  { %v60_v14 = vpop.permute.xlu1 %59 }
  0x85   :  { %v65_v20 = vpop.permute.xlu0 %64 }
  0x87   :  { %v55_v21 = vpop.permute.xlu1 %54 }
  0x8f   :  { %v102_v22 = vpop.f32.mrf.mxu0 }
  0x90   :  { %v103_v27 = vadd.f32 %v102_v22, %v55_v21 }
  0x93   :  { %v105_v16 = vpop.f32.mrf.mxu2 }
  0x94   :  { %v111_v17 = vpop.f32.mrf.mxu3  ;;  %v106_v24 = vadd.f32 %v105_v16, %v60_v14 }
  0x95   :  { %v112_v18 = vadd.f32 %v111_v17, %v70_v13 }
  0x97   :  { %270 = vtanh.f32 %v112_v18 }
  0x9b   :  { %v108_v23 = vpop.f32.mrf.mxu2 }
  0x9c   :  { %v109_v25 = vadd.f32 %v108_v23, %v65_v20 }
  0x9d   :  { %v271_v26 = vpop.eup %270 }
  0x9e   :  { %272 = vtanh.f32 %v109_v25  ;;  %150 = vmatpush.msra.mxu1 %v271_v26 }
  0x9f   :  { %274 = vtanh.f32 %v106_v24 }
  0xa0   :  { %276 = vtanh.f32 %v103_v27 }
  0xa4   :  { %v273_v28 = vpop.eup %272 }
  0xa5   :  { %151 = vmatpush.msra.mxu1 %v273_v28  ;;  %v275_v29 = vpop.eup %274 }
  0xa6   :  { %v277_v31 = vpop.eup %276 }
  0xa7   :  { %152 = vmatpush.msra.mxu1 %v275_v29 }
  0xa9   :  { %153 = vmatpush.msra.mxu1 %v277_v31 }
  0xaa   :  { %244 = vmatmul.msk.f32.vlgmr.msra.gmra.mxu1 %vm72_vm0, %v118_v30 }
  0xb2   :  { %245 = vmatmul.msk.f32.gmra.mxu1 %vm72_vm0, %v119_v32 }
 0x127   :  { %v155_v34 = vpop.f32.mrf.mxu1 }
 0x128   :  { %v156_v35 = vadd.f32 %v155_v34, %v125_v33 }
 0x12a   :  { %278 = vtanh.f32 %v156_v35 }
 0x12f   :  { %v158_v37 = vpop.f32.mrf.mxu1 }
 0x130   :  { %v279_v38 = vpop.eup %278  ;;  %v159_v39 = vadd.f32 %v158_v37, %v130_v36 }
 0x131   :  { %v163_v40 = vmul.f32 25.0, %v279_v38 }
 0x132   :  { %280 = vtanh.f32 %v159_v39 }
 0x133   :  { %v164_v41 = vadd.f32 25.0, %v163_v40 }
 0x135   :  { %167 = vst [vmem:[#allocation6] sm:$0xff] %v164_v41  ;;  %v246_v43 = vadd.f32 -5.0, %v164_v41  ;;  %v170_v44 = vsub.f32 45.0, %v164_v41  ;;  %v248_v46 = vadd.f32 -25.0, %v164_v41 }
 0x137   :  { %v171_v48 = vmin.f32 %v246_v43, %v170_v44  ;;  %v177_v52 = vand.u32 2147483647, %v248_v46 }
 0x138   :  { %v281_v42 = vpop.eup %280 }
 0x139   :  { %v165_v45 = vmul.f32 25.0, %v281_v42 }
 0x13b   :  { %v166_v47 = vadd.f32 25.0, %v165_v45 }
 0x13d   :  { %v247_v49 = vadd.f32 -5.0, %v166_v47  ;;  %v249_v50 = vadd.f32 -25.0, %v166_v47  ;;  %v251_v51 = vadd.f32 -15.0, %v166_v47  ;;  %168 = vst [vmem:[#allocation6 + $0x8] sm:$0xff] %v166_v47  ;;  %v174_v56 = vsub.f32 45.0, %v166_v47 }
 0x13e   :  { %228 = dma.vmem_to_hbm [thread:$0]  %s221_s25, 256, %s223_s3, [#allocation7], %s361_s26, %s361_s26, %s362_s27  }
 0x13f   :  { %v173_v53 = vmin.f32 %v171_v48, %v247_v49  ;;  %v179_v54 = vand.u32 2147483647, %v249_v50  ;;  %v184_v55 = vand.u32 2147483647, %v251_v51  ;;  %s210_s26 = sshll.u32 %s365_s6, 4  ;;  %s211_s26 = int_to_ptr.vmem [resolvable:$true] %s210_s26 }
 0x141   :  { %v180_v57 = vmax.f32 %v177_v52, %v179_v54  ;;  %v185_v58 = vmax.f32 %v177_v52, %v184_v55  ;;  %v175_v59 = vmin.f32 %v173_v53, %v174_v56 }
 0x143   :  { %v250_v60 = vadd.f32 -5.0, %v180_v57  ;;  %v252_v62 = vadd.f32 -5.0, %v185_v58 }
 0x145   :  { %v182_v61 = vmin.f32 %v175_v59, %v250_v60 }
 0x147   :  { %v187_v63 = vmin.f32 %v182_v61, %v252_v62 }
 0x149   :  { %192 = vst [vmem:[#allocation5] sm:$0xff] %v187_v63 }
 0x150   :  { %v193_v0 = vld [vmem:[#allocation5] sm:$0x7f] }
 0x151   :  { %v194_v1 = vld [vmem:[#allocation5 + $0x1] sm:$0x7f] }
 0x152   :  { %v195_v2 = vmin.f32 %v193_v0, %v194_v1 }
 0x154   :  { %196 = vst [vmem:[#allocation5] sm:$0x7f] %v195_v2 }
 0x15b   :  { %v197_v3 = vld [vmem:[#allocation5] sm:$0x3f] }
 0x15c   :  { %v198_v4 = vld [vmem:[#allocation5 + $0x2] sm:$0x3f] }
 0x15d   :  { %v199_v5 = vmin.f32 %v197_v3, %v198_v4 }
 0x15f   :  { %200 = vst [vmem:[#allocation5] sm:$0x3f] %v199_v5 }
 0x166   :  { %v201_v6 = vld [vmem:[#allocation5] sm:$0xf]  ;;  %v202_v7 = vld [vmem:[#allocation5 + $0x4] sm:$0xf] }
 0x167   :  { %v203_v8 = vmin.f32 %v201_v6, %v202_v7 }
 0x169   :  { %204 = vst [vmem:[#allocation5] sm:$0xf] %v203_v8 }
 0x16a   :  { %215 = dma.vmem_to_hbm [thread:$0]  %s211_s26, 128, %s213_s30, [#allocation4]  }
 0x16b   :  { %356 = dma.done.wait [#allocation4], 128  }
 0x16c   :  { %357 = vsyncadd [#allocation4], 4294967168 }
 0x16d   :  { %358 = dma.done.wait [#allocation7], 256  }
 0x16e   :  { %359 = vsyncadd [#allocation7], 4294967040 }
 0x16f   :  { %237 = vsyncpa [#allocation3], 1 }
 0x170   :  { %238 = vsyncpa [#allocation4], 1 }
 0x171   :  { %239 = vsyncpa [#allocation7], 1 }

</bundles_post_ra>
